<compile_context>
chip_gen: v7x
topology: tpu7x:2x2x1
jax: 0.10.0
libtpu: 0.0.40
codegen_flags: <defaults>
</compile_context>

<pallas_src>
import jax
import jax.numpy as jnp
from jax.experimental import pallas as pl
from jax.experimental.pallas import tpu as pltpu

_LANES = 128
_TARGET_BLOCK_BYTES = 4 * 1024 * 1024      # ~4 MiB of HBM per input per grid step
_CHUNK_ROWS = 512                          # inner accumulation chunk (256 KiB f32)
_VMEM_LIMIT_BYTES = 48 * 1024 * 1024       # safe inside v7x's 64 MiB physical VMEM/TC


def _sublane_multiple(dtype) -> int:
    # f32 -> 8, bf16/f16 -> 16, int8/fp8 -> 32 (packed-sublane min tile rule).
    return max(8, 32 // jnp.dtype(dtype).itemsize)


def _round_up(n: int, m: int) -> int:
    return ((n + m - 1) // m) * m


def _make_kernel(eps, block_rows, chunk_rows, main_rows, ragged):
    eps = float(eps)                                 # Python scalar -> literal
    n_full = block_rows // chunk_rows                # >= 1
    rem_rows = block_rows - n_full * chunk_rows      # multiple of 8 (possibly 0)

    def kernel(x_ref, y_ref, o_ref):
        def chunk_sum(row_start, nrows, masked):
            xd = x_ref[pl.ds(row_start, nrows), :].astype(jnp.float32)
            yd = y_ref[pl.ds(row_start, nrows), :].astype(jnp.float32)
            d = xd - yd
            v = jnp.sqrt(d * d + eps)
            if masked:
                # Rows past the end of the slab hold Pallas-padded garbage:
                # mask with a select (NOT v * mask -- Inf * 0 would give NaN).
                row = jax.lax.broadcasted_iota(jnp.int32, (nrows, _LANES), 0)
                grow = pl.program_id(0) * block_rows + row_start + row
                v = jnp.where(grow < main_rows, v, 0.0)
            # (nrows, 128) -> (nrows//8, 8, 128): pure VPU vreg adds.
            return jnp.sum(v.reshape(-1, 8, _LANES), axis=0)

        def block_sum(masked):
            def body(c, accs):
                a0, a1 = accs
                start = pl.multiple_of(c * chunk_rows, 8)
                # Alternate accumulators to break the serial add chain.
                return a1, a0 + chunk_sum(start, chunk_rows, masked)

            init = (jnp.zeros((8, _LANES), jnp.float32),
                    jnp.zeros((8, _LANES), jnp.float32))
            acc0, acc1 = jax.lax.fori_loop(0, n_full, body, init,
                                           unroll=min(4, n_full))
            if rem_rows > 0:
                acc0 = acc0 + chunk_sum(n_full * chunk_rows, rem_rows, masked)
            return (acc0 + acc1).reshape(1, 8, _LANES)

        if ragged:
            is_last = pl.program_id(0) == pl.num_programs(0) - 1

            @pl.when(is_last)
            def _():
                o_ref[...] = block_sum(True)

            @pl.when(jnp.logical_not(is_last))
            def _():
                o_ref[...] = block_sum(False)
        else:
            o_ref[...] = block_sum(False)

    return kernel


def charbonnier_loss(x, y, eps=1e-6):
    assert x.shape == y.shape, (x.shape, y.shape)
    numel = x.size
    eps = float(eps)

    xf = jnp.ravel(x)
    yf = jnp.ravel(y)

    sub = max(_sublane_multiple(x.dtype), _sublane_multiple(y.dtype))
    itemsize = max(jnp.dtype(x.dtype).itemsize, jnp.dtype(y.dtype).itemsize)

    main_rows = numel // _LANES
    main_len = main_rows * _LANES
    tail = numel - main_len

    total = jnp.float32(0.0)
    start = 0

    if main_rows >= sub:
        # TODO(synk): when numel % 128 != 0 this slice may force XLA to copy
        # the main slab; a 1-D BlockSpec + in-kernel 2-D mask would avoid it
        # (rare for image tensors, so kept simple here).
        xm = xf if tail == 0 else jax.lax.slice(xf, (0,), (main_len,))
        ym = yf if tail == 0 else jax.lax.slice(yf, (0,), (main_len,))
        xm = xm.reshape(main_rows, _LANES)
        ym = ym.reshape(main_rows, _LANES)

        target_rows = max(sub, _TARGET_BLOCK_BYTES // (_LANES * itemsize))
        if main_rows >= 2 * sub:
            # Keep >= 2 grid steps so ("parallel",) can use both v7x TCs.
            block_rows = min(target_rows, _round_up(pl.cdiv(main_rows, 2), sub))
        else:
            block_rows = sub
        chunk_rows = min(_CHUNK_ROWS, block_rows)

        nblocks = pl.cdiv(main_rows, block_rows)
        ragged = (main_rows % block_rows) != 0

        partials = pl.pallas_call(
            _make_kernel(eps, block_rows, chunk_rows, main_rows, ragged),
            out_shape=jax.ShapeDtypeStruct((nblocks, 8, _LANES), jnp.float32),
            grid_spec=pltpu.PrefetchScalarGridSpec(
                num_scalar_prefetch=0,
                grid=(nblocks,),
                in_specs=[
                    pl.BlockSpec((block_rows, _LANES), lambda i: (i, 0)),
                    pl.BlockSpec((block_rows, _LANES), lambda i: (i, 0)),
                ],
                out_specs=pl.BlockSpec((1, 8, _LANES), lambda i: (i, 0, 0)),
            ),
            compiler_params=pltpu.CompilerParams(
                dimension_semantics=("parallel",),
                vmem_limit_bytes=_VMEM_LIMIT_BYTES,
            ),
        )(xm, ym)
        total = total + jnp.sum(partials)
        start = main_len

    if start < numel:
        # Sub-128-element tail (or tiny-input fallback) in plain JAX.
        xt = jax.lax.slice(xf, (start,), (numel,)).astype(jnp.float32)
        yt = jax.lax.slice(yf, (start,), (numel,)).astype(jnp.float32)
        dt = xt - yt
        total = total + jnp.sum(jnp.sqrt(dt * dt + eps))

    return total / numel


if __name__ == "__main__":
    key = jax.random.PRNGKey(0)
    kx, ky = jax.random.split(key)
    # NCHW like the PyTorch module would receive.
    x = jax.random.normal(kx, (2, 4, 16, 16), dtype=jnp.float32)
    y = jax.random.normal(ky, (2, 4, 16, 16), dtype=jnp.float32)

    loss = jax.block_until_ready(charbonnier_loss(x, y))

    # Reference check in plain JAX (same math as the PyTorch module).
    d = x - y
    ref = jnp.sum(jnp.sqrt(d * d + 1e-6)) / x.size
    assert jnp.allclose(loss, ref, rtol=1e-5, atol=1e-6), (loss, ref)

    print("KERNEL_OK")
</pallas_src>

<mosaic_0001>
module attributes {stable_mosaic.version = 11 : i64} {
  func.func @kernel(%arg0: i32, %arg1: memref<8x128xf32, #tpu.memory_space<vmem>>, %arg2: memref<8x128xf32, #tpu.memory_space<vmem>>, %arg3: memref<1x8x128xf32, #tpu.memory_space<vmem>>) attributes {dimension_semantics = [#tpu.dimension_semantics<parallel>], iteration_bounds = array<i64: 2>, scalar_prefetch = 0 : i64, scratch_operands = 0 : i64, tpu.core_type = #tpu.core_type<tc>, window_params = [{transform_indices = @transform_0, window_bounds = array<i64: 8, 128>}, {transform_indices = @transform_1, window_bounds = array<i64: 8, 128>}, {transform_indices = @transform_2, window_bounds = array<i64: 1, 8, 128>}]} {
    %cst = arith.constant 0.000000e+00 : f32
    %0 = vector.broadcast %cst : f32 to vector<8x128xf32>
    %cst_0 = arith.constant 0.000000e+00 : f32
    %1 = vector.broadcast %cst_0 : f32 to vector<8x128xf32>
    %c0_i32 = arith.constant 0 : i32
    %c8_i32 = arith.constant 8 : i32
    %2 = arith.muli %c0_i32, %c8_i32 : i32
    %3 = tpu.assume_multiple %2, 8 : i32
    %4 = arith.index_cast %3 : i32 to index
    %c0 = arith.constant 0 : index
    %5 = vector.load %arg1[%4, %c0] : memref<8x128xf32, #tpu.memory_space<vmem>>, vector<8x128xf32>
    %6 = arith.index_cast %3 : i32 to index
    %c0_1 = arith.constant 0 : index
    %7 = vector.load %arg2[%6, %c0_1] : memref<8x128xf32, #tpu.memory_space<vmem>>, vector<8x128xf32>
    %8 = arith.subf %5, %7 : vector<8x128xf32>
    %9 = arith.mulf %8, %8 : vector<8x128xf32>
    %cst_2 = arith.constant 9.99999997E-7 : f32
    %10 = vector.broadcast %cst_2 : f32 to vector<8x128xf32>
    %11 = arith.addf %9, %10 : vector<8x128xf32>
    %12 = math.sqrt %11 : vector<8x128xf32>
    %13 = vector.shape_cast %12 : vector<8x128xf32> to vector<1x8x128xf32>
    %cst_3 = arith.constant dense<0.000000e+00> : vector<8x128xf32>
    %14 = vector.multi_reduction <add>, %13, %cst_3 [0] : vector<1x8x128xf32> to vector<8x128xf32>
    %15 = arith.addf %0, %14 : vector<8x128xf32>
    %c1_i32 = arith.constant 1 : i32
    %16 = arith.addf %1, %15 : vector<8x128xf32>
    %17 = vector.shape_cast %16 : vector<8x128xf32> to vector<1x8x128xf32>
    %c0_4 = arith.constant 0 : index
    %c0_5 = arith.constant 0 : index
    %c0_6 = arith.constant 0 : index
    %18 = vector.load %arg3[%c0_4, %c0_5, %c0_6] : memref<1x8x128xf32, #tpu.memory_space<vmem>>, vector<1x8x128xf32>
    tpu.vector_store %arg3[%c0_4, %c0_5, %c0_6], %17 {strides = array<i32>} : memref<1x8x128xf32, #tpu.memory_space<vmem>>, vector<1x8x128xf32>,
    return
  }
  func.func @transform_0(%arg0: i32) -> (i32, i32) {
    %c0_i32 = arith.constant 0 : i32
    %c0_i32_0 = arith.constant 0 : i32
    return %arg0, %c0_i32 : i32, i32
  }
  func.func @transform_1(%arg0: i32) -> (i32, i32) {
    %c0_i32 = arith.constant 0 : i32
    %c0_i32_0 = arith.constant 0 : i32
    return %arg0, %c0_i32 : i32, i32
  }
  func.func @transform_2(%arg0: i32) -> (i32, i32, i32) {
    %c0_i32 = arith.constant 0 : i32
    %c0_i32_0 = arith.constant 0 : i32
    %c0_i32_1 = arith.constant 0 : i32
    return %arg0, %c0_i32, %c0_i32_0 : i32, i32, i32
  }
}

</mosaic_0001>

<bundles_post_ra>
// kernel: tpu_custom_call.1
= control target key start
LH: loop header
LB: loop body
LE: loop exit
PB: predicated region body
PF: predicated region fallthrough
CT: control target
= control target key end

     0   :  { %7 = vsyncpa [#allocation3], 0  ;;  %s746_s0 = inlined_call_operand.hbm [shape: f32[16,128], index: 0, kind: input, shape index: {}]   ;;  %s747_s1 = inlined_call_operand.hbm [shape: f32[16,128], index: 1, kind: input, shape index: {}]   ;;  %s748_s2 = inlined_call_operand.hbm [shape: f32[2,8,128], index: 2, kind: output, shape index: {}]  }
   0x1   :  { %9 = vsyncpa [#allocation3 + $0x1], 0 }
   0x2   :  { %10 = vsyncpa [#allocation6], 0 }
   0x3   :  { %12 = vsyncpa [#allocation6 + $0x1], 0 }
   0x4   :  { %13 = vsyncpa [#allocation4], 0 }
   0x5   :  { %15 = vsyncpa [#allocation4 + $0x1], 0  ;;  %s537_s9 = smov 0   ;;  %s539_s10 = smov 0  }
   0x6   :  { %s541_s11 = smov 0   ;;  %s543_s12 = smov 0  }
   0x7 LB: > { %s558_s13 = sadd.s32 4294967295, %s517_s12   ;;  %s319_s14 = sadd.s32 4294967294, %s517_s12   ;;  %s517_s12 = sphi %s543_s12, %s767_s12   ;;  %s513_s11 = sphi %s541_s11, %s766_s11   ;;  %s509_s10 = sphi %s539_s10, %s765_s10   ;;  %s505_s9 = sphi %s537_s9, %s764_s9  }
   0x8   : > { %s562_s15 = sadd.s32 1, %s517_s12   ;;  %s28_s16 = sadd.s32 1, %s513_s11 }
   0x9   : > { %s25_s17 = ssub.s32 %s517_s12, %s562_s15  ;;  %p35_p0 = scmp.ne.s32.totalorder %s513_s11, %s509_s10 }
   0xa   : > { %p26_p1 = scmp.eq.s32.totalorder %s25_s17, 0  ;;  %p36_p2 = scmp.eq.s32.totalorder %s517_s12, 0 }
   0xb   : > { %p41_p3 = scmp.ne.s32.totalorder %s509_s10, %s505_s9  ;;  %p42_p4 = scmp.eq.s32.totalorder %s558_s13, 0 }
   0xc   : > { %s574_s18 = scalar_select %p26_p1, %s513_s11, %s28_s16  }
   0xd   : > { %p576_p5 = por %p36_p2, %p35_p0  ;;  %p580_p6 = por %p42_p4, %p41_p3 }
   0xe   : > { %p91_p7 = scmp.eq.s32.totalorder %s558_s13, 1  ;;  %p97_p8 = scmp.eq.s32.totalorder %s319_s14, 1 }
   0xf   : > { %s752_s20 = scalar_select %p580_p6, 1, 0 }
  0x10   : > { %p351_p10 = scmp.lt.s32.totalorder %s517_s12, 2  ;;  %p587_p11 = por %p91_p7, %p35_p0 }
  0x11   : > { %p591_p12 = por %p97_p8, %p41_p3  ;;  %s596_s23 = sand.u32 1, %s513_s11  }
  0x12   : > { %s753_s21 = scalar_select %p587_p11, 1, 0 }
  0x13   : > { %s754_s22 = scalar_select %p591_p12, 1, 0 }
  0x14   : > { %s323_s24 = sshll.u32 %s517_s12, 7  ;;  %s322_s25 = sshll.u32 %s596_s23, 3 }
  0x15   : > { %s605_s28 = scalar_lea.hbm %s746_s0, %s323_s24  ;;  %s121_s29 = scalar_lea.vmem [#allocation2], %s322_s25 }
  0x16   : > { %s128_s30 = sshll.u32 %s121_s29, 4  ;;  %p611_p13 = pnand %p351_p10, %p576_p5  ;;  %s615_s30 = int_to_ptr.vmem [resolvable:$true] %s128_s30 }
  0x17   : > { %s118_s4 = scalar_lea.sflag [#allocation3], %s596_s23  ;;  %s387_s5 = scalar_lea.hbm %s605_s28, 128 }
  0x18   : > { %p388_p2 = scmp.ne.s32.totalorder %s605_s28, %s387_s5  ;;  %p389_p3 = pneg %p611_p13 }
  0x19   : > { %s392_s8 = scalar_lea.hbm %s746_s0, 256  ;;  %p393_p5 = scmp.lt.u32.totalorder %s605_s28, %s746_s0 }
  0x1a   : > { %p390_p4 = pnand %p389_p3, %p388_p2  ;;  %p394_p8 = scmp.lt.u32.totalorder %s392_s8, %s387_s5 }
  0x1b   : > { %p396_p9 = scmp.lt.u32.totalorder %s387_s5, %s605_s28 }
  0x1c   : > { %p391_p7 = pneg %p390_p4  ;;  %p395_p10 = por %p394_p8, %p393_p5 }
  0x1e   : > { %p397_p0 = por %p396_p9, %p395_p10 }
  0x20   : > { %p398_p1 = pnand %p397_p0, %p391_p7 }
  0x22   : > { %401 = shalt.err (!%p398_p1)
}
  0x23   : > { %s402_s17 = scalar_lea.vmem %s615_s30, 128  ;;  %s519_s19 = smov [#allocation2]  }
  0x24   : > { %p403_p2 = scmp.ne.s32.totalorder %s615_s30, %s402_s17  ;;  %s407_s26 = sshll.u32 %s519_s19, 4  ;;  %s408_s26 = int_to_ptr.vmem [resolvable:$false] %s407_s26 }
  0x25   : > { %s409_s27 = scalar_lea.vmem %s408_s26, 256  ;;  %p410_p11 = scmp.lt.s32.totalorder %s615_s30, %s408_s26 }
  0x26   : > { %p405_p4 = pnand %p403_p2, %p389_p3  ;;  %p411_p5 = scmp.lt.s32.totalorder %s409_s27, %s402_s17 }
  0x28   : > { %p406_p12 = pneg %p405_p4  ;;  %p412_p8 = por %p411_p5, %p410_p11 }
  0x2a   : > { %p413_p9 = pnand %p412_p8, %p406_p12 }
  0x2c   : > { %416 = shalt.err (!%p413_p9)
}
  0x2d   : > { %343 = dma.hbm_to_vmem [thread:$0]  (!%p611_p13), %s605_s28, 128, %s615_s30, %s118_s4  }
  0x2e   : > { %p756_p0 = scmp.lt.s32.totalorder %s517_s12, 3  ;;  %p757_p1 = scmp.ge.s32.totalorder %s517_s12, 1 }
  0x2f   : > { %s658_s7 = scalar_lea.hbm %s747_s1, %s323_s24  ;;  %s139_s8 = scalar_lea.vmem [#allocation5], %s322_s25 }
  0x30   : > { %p649_p7 = pnand %p757_p1, %p756_p0  ;;  %s146_s14 = sshll.u32 %s139_s8, 4  ;;  %s147_s14 = int_to_ptr.vmem [resolvable:$true] %s146_s14 }
  0x31   : > { %s136_s28 = scalar_lea.sflag [#allocation6], %s596_s23  ;;  %s417_s30 = scalar_lea.hbm %s658_s7, 128 }
  0x32   : > { %s758_s29 = scalar_select %p649_p7, 1, 0 }
  0x33   : > { %p418_p11 = scmp.ne.s32.totalorder %s658_s7, %s417_s30  ;;  %s422_s24 = scalar_lea.hbm %s747_s1, 256 }
  0x34   : > { %p423_p2 = scmp.lt.u32.totalorder %s658_s7, %s747_s1  ;;  %p424_p4 = scmp.lt.u32.totalorder %s422_s24, %s417_s30 }
  0x35   : > { %p420_p12 = pnand %p418_p11, %p389_p3  ;;  %p426_p8 = scmp.lt.u32.totalorder %s417_s30, %s658_s7 }
  0x36   : > { %p425_p5 = por %p424_p4, %p423_p2 }
  0x37   : > { %p421_p10 = pneg %p420_p12 }
  0x38   : > { %p427_p9 = por %p426_p8, %p425_p5 }
  0x3a   : > { %p428_p0 = pnand %p427_p9, %p421_p10 }
  0x3c   : > { %431 = shalt.err (!%p428_p0)
}
  0x3d   : > { %s432_s23 = scalar_lea.vmem %s147_s14, 128  ;;  %s520_s25 = smov [#allocation5]  }
  0x3e   : > { %p433_p1 = scmp.ne.s32.totalorder %s147_s14, %s432_s23  ;;  %s437_s26 = sshll.u32 %s520_s25, 4  ;;  %s438_s26 = int_to_ptr.vmem [resolvable:$false] %s437_s26 }
  0x3f   : > { %s439_s27 = scalar_lea.vmem %s438_s26, 256  ;;  %p440_p6 = scmp.lt.s32.totalorder %s147_s14, %s438_s26 }
  0x40   : > { %p435_p11 = pnand %p433_p1, %p389_p3  ;;  %p441_p7 = scmp.lt.s32.totalorder %s439_s27, %s432_s23 }
  0x42   : > { %p436_p12 = pneg %p435_p11  ;;  %p442_p2 = por %p441_p7, %p440_p6 }
  0x44   : > { %p443_p4 = pnand %p442_p2, %p436_p12 }
  0x46   : > { %446 = shalt.err (!%p443_p4)
}
  0x47   : > { %346 = dma.hbm_to_vmem [thread:$0]  (!%p611_p13), %s658_s7, 128, %s147_s14, %s136_s28  }
  0x48   : > { %p759_p10 = scmp.ne.s32.totalorder %s758_s29, 0 }
  0x49   : > { %s685_s5 = sand.u32 (!%p759_p10), 1, %s509_s10   ;;  %p760_p3 = scmp.ne.s32.totalorder (!%p759_p10), %s752_s20, 0 }
  0x4a   : > { %155 = sbr.rel (%p759_p10) target bundleno = 120 (0x78), region = 28  ;;  %s327_s6 = sshll.u32 (!%p759_p10), %s685_s5, 3 }
  0x4b   : > { %s158_s8 = scalar_lea.sflag (!%p759_p10), [#allocation3], %s685_s5  ;;  %s161_s30 = scalar_lea.vmem (!%p759_p10), [#allocation2], %s327_s6 }
  0x51   : > { %492 = dma.done.wait (%p760_p3), %s158_s8, 128  }
  0x52   : > { %494 = vsyncadd (%p760_p3), %s158_s8, 4294967168  ;;  %s167_s3 = scalar_lea.sflag [#allocation6], %s685_s5  ;;  %s170_s7 = scalar_lea.vmem [#allocation5], %s327_s6 }
  0x53   : > { %496 = dma.done.wait (%p760_p3), %s167_s3, 128  }
  0x54   : > { %498 = vsyncadd (%p760_p3), %s167_s3, 4294967168  ;;  %v196_v0 = vld [vmem:[%s161_s30] sm:$0xff]  ;;  %v197_v1 = vld [vmem:[%s170_s7] sm:$0xff]  ;;  %s195_s29 = scalar_lea.vmem [#allocation7], %s327_s6  ;;  %s331_s28 = sshll.u32 %s558_s13, 7 }
  0x55   : > { %v198_v2 = vsub.f32 %v196_v0, %v197_v1  ;;  %s226_s14 = sshll.u32 %s195_s29, 4  ;;  %s704_s16 = scalar_lea.hbm %s748_s2, %s331_s28  ;;  %s699_s14 = int_to_ptr.vmem [resolvable:$true] %s226_s14 }
  0x56   : > { %s213_s24 = scalar_lea.sflag [#allocation4], %s685_s5  ;;  %s447_s17 = scalar_lea.vmem %s699_s14, 128 }
  0x57   : > { %v199_v3 = vmul.f32 %v198_v2, %v198_v2  ;;  %p448_p6 = scmp.ne.s32.totalorder %s699_s14, %s447_s17  ;;  %p761_p13 = scmp.ne.s32.totalorder %s753_s21, 0 }
  0x58   : > { %s521_s13 = smov [#allocation7]  }
  0x59   : > { %v200_v4 = vadd.f32 1e-06, %v199_v3  ;;  %p449_p7 = pnand %p448_p6, %p761_p13  ;;  %s451_s19 = sshll.u32 %s521_s13, 4  ;;  %s452_s19 = int_to_ptr.vmem [resolvable:$false] %s451_s19 }
  0x5a   : > { %s453_s23 = scalar_lea.vmem %s452_s19, 256  ;;  %p454_p8 = scmp.lt.s32.totalorder %s699_s14, %s452_s19 }
  0x5b   : > { %385 = vrsqrt.f32 %v200_v4  ;;  %vm203_vm0 = vcmp.eq.f32.partialorder %v200_v4, inf  ;;  %v206_v6 = vand.u32 2147483648, %v200_v4  ;;  %vm205_vm1 = vcmp.eq.f32.partialorder %v200_v4, 0.0  ;;  %p450_p5 = pneg %p449_p7  ;;  %p455_p9 = scmp.lt.s32.totalorder %s453_s23, %s447_s17 }
  0x5d   : > { %p456_p0 = por %p455_p9, %p454_p8 }
  0x5f   : > { %p457_p1 = pnand %p456_p0, %p450_p5 }
  0x65   : > { %v386_v5 = vpop.eup %385 }
  0x66   : > { %v202_v7 = vmul.f32 %v386_v5, %v200_v4 }
  0x68   : > { %v204_v8 = vsel %vm203_vm0, %v200_v4, %v202_v7 }
  0x69   : > { %v207_v9 = vsel %vm205_vm1, %v206_v6, %v204_v8 }
  0x6a   : > { %211 = vst [vmem:[%s195_s29] sm:$0xff] %v207_v9 }
  0x6b   : > { %460 = shalt.err (!%p457_p1)
}
  0x6c   : > { %s461_s25 = scalar_lea.hbm %s704_s16, 128  ;;  %s465_s5 = scalar_lea.hbm %s748_s2, 256 }
  0x6d   : > { %p462_p11 = scmp.ne.s32.totalorder %s704_s16, %s461_s25  ;;  %p466_p4 = scmp.lt.u32.totalorder %s704_s16, %s748_s2 }
  0x6e   : > { %p467_p10 = scmp.lt.u32.totalorder %s465_s5, %s461_s25  ;;  %p469_p6 = scmp.lt.u32.totalorder %s461_s25, %s704_s16 }
  0x6f   : > { %p463_p12 = pnand %p462_p11, %p761_p13 }
  0x70   : > { %p468_p3 = por %p467_p10, %p466_p4 }
  0x71   : > { %p464_p2 = pneg %p463_p12 }
  0x72   : > { %p470_p7 = por %p469_p6, %p468_p3 }
  0x74   : > { %p471_p5 = pnand %p470_p7, %p464_p2 }
  0x76   : > { %474 = shalt.err (!%p471_p5)
}
  0x77   : > { %338 = dma.vmem_to_hbm [thread:$0]  (%p761_p13), %s699_s14, 128, %s704_s16, %s213_s24  }
  0x78 PF: > { %s238_s30 = sand.u32 1, %s505_s9   ;;  %p762_p8 = scmp.ne.s32.totalorder %s754_s22, 0 }
  0x79   : > { %p763_p9 = scmp.ge.s32.totalorder %s517_s12, 2  ;;  %s239_s3 = scalar_lea.sflag [#allocation4], %s238_s30 }
  0x7b   : > { %p348_p0 = pnand %p763_p9, %p762_p8 }
  0x7d   : > { %500 = dma.done.wait (!%p348_p0), %s239_s3, 128  }
  0x7e   : > { %502 = vsyncadd (!%p348_p0), %s239_s3, 4294967168  ;;  %p18_p1 = scmp.ge.s32.totalorder %s562_s15, 4   ;;  %s764_s9 = smov %s509_s10 }
  0x7f   : > { %s765_s10 = smov %s513_s11  ;;  %s766_s11 = smov %s574_s18 }
  0x80   : > { %s767_s12 = smov %s562_s15  ;;  %20 = sbr.rel (!%p18_p1) target bundleno = 7 (0x7), region = 86 }
  0x87   :  { %244 = vsyncpa [#allocation3], 1 }
  0x88   :  { %246 = vsyncpa [#allocation3 + $0x1], 1 }
  0x89   :  { %247 = vsyncpa [#allocation6], 1 }
  0x8a   :  { %249 = vsyncpa [#allocation6 + $0x1], 1 }
  0x8b   :  { %250 = vsyncpa [#allocation4], 1 }
  0x8c   :  { %252 = vsyncpa [#allocation4 + $0x1], 1 }

</bundles_post_ra>
